<compile_context>
chip_gen: v7x
topology: tpu7x:2x2x1
jax: 0.10.0
libtpu: 0.0.40
codegen_flags: <defaults>
</compile_context>

<pallas_src>
import jax
import jax.numpy as jnp
from jax.experimental import pallas as pl
from jax.experimental.pallas import tpu as pltpu

_H1, _H2 = 300, 100  # PyTorch hidden sizes


def _round_up(x, m):
    return (x + m - 1) // m * m


def _cdiv(a, b):
    return -(-a // b)


# --------------------------------------------------------------------------- #
# Kernel: one batch tile through the whole encoder + decoder.
# --------------------------------------------------------------------------- #
def _lenet_kernel(x_ref,
                  w1_ref, b1_ref, w2_ref, b2_ref, w3_ref, b3_ref,
                  w4_ref, b4_ref, w5_ref, b5_ref, w6_ref, b6_ref,
                  enc_ref, dec_ref):
    def linear(h, w_ref, b_ref):
        # bf16 operands on the MXU, f32 accumulation; bias add stays f32
        # (v5e-safe; the elementwise tail is not the bottleneck here).
        return jnp.dot(h.astype(jnp.bfloat16), w_ref[...],
                       preferred_element_type=jnp.float32) + b_ref[...]

    x = x_ref[...]  # (TB, n_in_p) bf16

    # encoder: Linear -> ReLU -> Linear -> ReLU -> Linear
    h = jnp.maximum(linear(x, w1_ref, b1_ref), 0.0)
    h = jnp.maximum(linear(h, w2_ref, b2_ref), 0.0)
    enc = linear(h, w3_ref, b3_ref)                      # f32, kept for decoder
    enc_ref[...] = enc.astype(enc_ref.dtype)             # bf16 writeback

    # decoder: Linear -> ReLU -> Linear -> ReLU -> Linear
    d = jnp.maximum(linear(enc, w4_ref, b4_ref), 0.0)
    d = jnp.maximum(linear(d, w5_ref, b5_ref), 0.0)
    dec_ref[...] = linear(d, w6_ref, b6_ref).astype(dec_ref.dtype)  # bf16 writeback


# --------------------------------------------------------------------------- #
# Parameter packing: pad feature dims to multiples of 128, cast weights to bf16.
# --------------------------------------------------------------------------- #
def pack_params(params, n_inputs, n_outputs):
    n_in_p = _round_up(n_inputs, 128)
    n_out_p = _round_up(n_outputs, 128)
    h1_p = _round_up(_H1, 128)   # 300 -> 384
    h2_p = _round_up(_H2, 128)   # 100 -> 128
    dims_p = [(n_in_p, h1_p), (h1_p, h2_p), (h2_p, n_out_p),     # encoder
              (n_out_p, h2_p), (h2_p, h1_p), (h1_p, n_in_p)]     # decoder
    packed = {}
    for i, (fi_p, fo_p) in enumerate(dims_p, start=1):
        w = params[f"w{i}"]
        b = params[f"b{i}"]
        wp = jnp.zeros((fi_p, fo_p), jnp.float32).at[:w.shape[0], :w.shape[1]].set(w)
        bp = jnp.zeros((1, fo_p), jnp.float32).at[:, :b.shape[1]].set(b)
        packed[f"w{i}"] = wp.astype(jnp.bfloat16)   # MXU operands
        packed[f"b{i}"] = bp                        # f32 bias add
    return packed


# --------------------------------------------------------------------------- #
# Batch-tile selection.
# --------------------------------------------------------------------------- #
def _choose_batch_tile(batch, block_batch):
    """Tile is a multiple of 16 (bf16 sublane packing), <= block_batch, sized
    from ceil(batch / n_tiles) so batch padding stays under one sub-tile, and
    the grid has >=2 steps whenever the batch is big enough (v7x megacore +
    overlap of x-in / dec-out DMAs with compute)."""
    batch16 = _round_up(batch, 16)
    if batch16 <= 16:                      # tiny batch: splitting only adds padding
        return batch16
    n_tiles = max(2, _cdiv(batch16, block_batch))
    return _round_up(_cdiv(batch, n_tiles), 16)


# --------------------------------------------------------------------------- #
# Wrapper.
# --------------------------------------------------------------------------- #
def lenet_300_100_forward(x, packed, n_inputs, n_outputs, block_batch=512):
    """Fused forward. Returns (encode, decode) as f32 with original (unpadded) shapes.

    Note: x is truncated to bf16 before the first matmul (intentional: bf16 MXU
    operands with f32 accumulation), and outputs are written back from the
    kernel in bf16 then cast to f32 here.
    """
    batch = x.shape[0]
    n_in_p = packed["w1"].shape[0]
    n_out_p = packed["w3"].shape[1]
    h1_p = packed["w1"].shape[1]

    tb = _choose_batch_tile(batch, block_batch)
    batch_p = _round_up(batch, tb)
    grid = (batch_p // tb,)

    # Pad x: batch -> multiple of TB, features -> 128 lanes; bf16 halves the DMA.
    x_p = jnp.zeros((batch_p, n_in_p), jnp.bfloat16).at[:batch, :n_inputs].set(
        x.astype(jnp.bfloat16))

    batch_map = lambda i: (i, 0)
    const_map = lambda i: (0, 0)          # weights/biases: resident in VMEM
    full_spec = lambda a: pl.BlockSpec(a.shape, const_map)

    in_specs = [pl.BlockSpec((tb, n_in_p), batch_map)]
    args = [x_p]
    for i in range(1, 7):
        w, b = packed[f"w{i}"], packed[f"b{i}"]
        in_specs += [full_spec(w), full_spec(b)]
        args += [w, b]

    # --- VMEM budget from the actual tile math (review item) -----------------
    weight_bytes = sum(packed[f"w{i}"].size * 2 + packed[f"b{i}"].size * 4
                       for i in range(1, 7))
    io_bytes = tb * (2 * n_in_p + n_out_p) * 2      # x-in + dec-out + enc-out (bf16)
    interm_bytes = 6 * tb * h1_p * 4                # bound on live f32 intermediates
    vmem_limit = int(1.25 * (2 * weight_bytes + 2 * io_bytes + interm_bytes)) + (4 << 20)
    vmem_limit = min(max(vmem_limit, 16 << 20), 48 << 20)   # stay under v7x's 64 MiB

    flops = 2 * batch_p * sum(
        packed[f"w{i}"].shape[0] * packed[f"w{i}"].shape[1] for i in range(1, 7))
    bytes_accessed = (
        x_p.size * 2 + batch_p * (n_out_p + n_in_p) * 2 + weight_bytes)

    enc_p, dec_p = pl.pallas_call(
        _lenet_kernel,
        grid=grid,
        in_specs=in_specs,
        out_specs=(pl.BlockSpec((tb, n_out_p), batch_map),
                   pl.BlockSpec((tb, n_in_p), batch_map)),
        out_shape=(jax.ShapeDtypeStruct((batch_p, n_out_p), jnp.bfloat16),
                   jax.ShapeDtypeStruct((batch_p, n_in_p), jnp.bfloat16)),
        compiler_params=pltpu.CompilerParams(
            dimension_semantics=("parallel",),      # v7x: shard batch tiles on 2 TCs
            vmem_limit_bytes=vmem_limit),
        cost_estimate=pl.CostEstimate(
            flops=flops, transcendentals=0, bytes_accessed=bytes_accessed),
    )(*args)

    enc = enc_p[:batch, :n_outputs].astype(jnp.float32)
    dec = dec_p[:batch, :n_inputs].astype(jnp.float32)
    return enc, dec


# --------------------------------------------------------------------------- #
# Init + reference.
# --------------------------------------------------------------------------- #
def init_params(key, n_inputs, n_outputs=2):
    """Deterministic synthetic parameters (PyTorch-like uniform init), f32 unpadded."""
    dims = [(n_inputs, _H1), (_H1, _H2), (_H2, n_outputs),
            (n_outputs, _H2), (_H2, _H1), (_H1, n_inputs)]
    params = {}
    keys = jax.random.split(key, 2 * len(dims))
    for i, (fan_in, fan_out) in enumerate(dims):
        bound = 1.0 / jnp.sqrt(float(fan_in))
        params[f"w{i+1}"] = jax.random.uniform(
            keys[2 * i], (fan_in, fan_out), jnp.float32, -bound, bound)
        params[f"b{i+1}"] = jax.random.uniform(
            keys[2 * i + 1], (1, fan_out), jnp.float32, -bound, bound)
    return params


def reference_forward(x, params):
    """Plain-JAX reference with the same bf16-operand / f32-accumulate numerics."""
    def lin(h, w, b):
        return jnp.dot(h.astype(jnp.bfloat16), w.astype(jnp.bfloat16),
                       preferred_element_type=jnp.float32) + b
    h = jnp.maximum(lin(x, params["w1"], params["b1"]), 0.0)
    h = jnp.maximum(lin(h, params["w2"], params["b2"]), 0.0)
    enc = lin(h, params["w3"], params["b3"])
    d = jnp.maximum(lin(enc, params["w4"], params["b4"]), 0.0)
    d = jnp.maximum(lin(d, params["w5"], params["b5"]), 0.0)
    dec = lin(d, params["w6"], params["b6"])
    return enc, dec


if __name__ == "__main__":
    key = jax.random.PRNGKey(0)
    k_x, k_p = jax.random.split(key)

    # Small shapes; batch=32 exercises the multi-tile (2-step grid) path.
    batch, n_inputs, n_outputs = 32, 64, 2
    x = jax.random.normal(k_x, (batch, n_inputs), jnp.float32)
    params = init_params(k_p, n_inputs, n_outputs)
    packed = pack_params(params, n_inputs, n_outputs)

    fwd = jax.jit(lenet_300_100_forward, static_argnums=(2, 3))
    enc, dec = fwd(x, packed, n_inputs, n_outputs)
    jax.block_until_ready((enc, dec))

    enc_ref, dec_ref = reference_forward(x, params)
    assert enc.shape == (batch, n_outputs) and dec.shape == (batch, n_inputs)
    # Outputs are written back in bf16 (HBM-traffic optimization), so compare
    # against the f32 reference with a bf16-rounding-aware tolerance.
    assert jnp.allclose(enc, enc_ref, atol=2e-2, rtol=2e-2), "encode mismatch"
    assert jnp.allclose(dec, dec_ref, atol=2e-2, rtol=2e-2), "decode mismatch"

    print("KERNEL_OK")
</pallas_src>

<mosaic_0001>
module attributes {stable_mosaic.version = 11 : i64} {
  func.func @_lenet_kernel(%arg0: i32, %arg1: memref<16x128xbf16, #tpu.memory_space<vmem>>, %arg2: memref<128x384xbf16, #tpu.memory_space<vmem>>, %arg3: memref<1x384xf32, #tpu.memory_space<vmem>>, %arg4: memref<384x128xbf16, #tpu.memory_space<vmem>>, %arg5: memref<1x128xf32, #tpu.memory_space<vmem>>, %arg6: memref<128x128xbf16, #tpu.memory_space<vmem>>, %arg7: memref<1x128xf32, #tpu.memory_space<vmem>>, %arg8: memref<128x128xbf16, #tpu.memory_space<vmem>>, %arg9: memref<1x128xf32, #tpu.memory_space<vmem>>, %arg10: memref<128x384xbf16, #tpu.memory_space<vmem>>, %arg11: memref<1x384xf32, #tpu.memory_space<vmem>>, %arg12: memref<384x128xbf16, #tpu.memory_space<vmem>>, %arg13: memref<1x128xf32, #tpu.memory_space<vmem>>, %arg14: memref<16x128xbf16, #tpu.memory_space<vmem>>, %arg15: memref<16x128xbf16, #tpu.memory_space<vmem>>) attributes {dimension_semantics = [#tpu.dimension_semantics<parallel>], iteration_bounds = array<i64: 2>, scalar_prefetch = 0 : i64, scratch_operands = 0 : i64, tpu.core_type = #tpu.core_type<tc>, window_params = [{transform_indices = @transform_0, window_bounds = array<i64: 16, 128>}, {pipeline_mode = #tpu.pipeline_mode<synchronous>, transform_indices = @transform_1, window_bounds = array<i64: 128, 384>}, {pipeline_mode = #tpu.pipeline_mode<synchronous>, transform_indices = @transform_2, window_bounds = array<i64: 1, 384>}, {pipeline_mode = #tpu.pipeline_mode<synchronous>, transform_indices = @transform_3, window_bounds = array<i64: 384, 128>}, {pipeline_mode = #tpu.pipeline_mode<synchronous>, transform_indices = @transform_4, window_bounds = array<i64: 1, 128>}, {pipeline_mode = #tpu.pipeline_mode<synchronous>, transform_indices = @transform_5, window_bounds = array<i64: 128, 128>}, {pipeline_mode = #tpu.pipeline_mode<synchronous>, transform_indices = @transform_6, window_bounds = array<i64: 1, 128>}, {pipeline_mode = #tpu.pipeline_mode<synchronous>, transform_indices = @transform_7, window_bounds = array<i64: 128, 128>}, {pipeline_mode = #tpu.pipeline_mode<synchronous>, transform_indices = @transform_8, window_bounds = array<i64: 1, 128>}, {pipeline_mode = #tpu.pipeline_mode<synchronous>, transform_indices = @transform_9, window_bounds = array<i64: 128, 384>}, {pipeline_mode = #tpu.pipeline_mode<synchronous>, transform_indices = @transform_10, window_bounds = array<i64: 1, 384>}, {pipeline_mode = #tpu.pipeline_mode<synchronous>, transform_indices = @transform_11, window_bounds = array<i64: 384, 128>}, {pipeline_mode = #tpu.pipeline_mode<synchronous>, transform_indices = @transform_12, window_bounds = array<i64: 1, 128>}, {transform_indices = @transform_13, window_bounds = array<i64: 16, 128>}, {transform_indices = @transform_14, window_bounds = array<i64: 16, 128>}]} {
    %c0 = arith.constant 0 : index
    %c0_0 = arith.constant 0 : index
    %0 = vector.load %arg1[%c0, %c0_0] : memref<16x128xbf16, #tpu.memory_space<vmem>>, vector<16x128xbf16>
    %c0_1 = arith.constant 0 : index
    %c0_2 = arith.constant 0 : index
    %1 = vector.load %arg2[%c0_1, %c0_2] : memref<128x384xbf16, #tpu.memory_space<vmem>>, vector<128x384xbf16>
    %cst = arith.constant dense<0.000000e+00> : vector<16x384xf32>
    %2 = tpu.matmul %0, %1, %cst {dimension_numbers = #tpu.dot_dimension_numbers<[1], [0], [0], [1], [0, 0, 1, 1], [], []>} : vector<16x128xbf16>, vector<128x384xbf16>, vector<16x384xf32> -> vector<16x384xf32>
    %c0_3 = arith.constant 0 : index
    %c0_4 = arith.constant 0 : index
    %3 = vector.load %arg3[%c0_3, %c0_4] : memref<1x384xf32, #tpu.memory_space<vmem>>, vector<1x384xf32>
    %4 = vector.broadcast %3 : vector<1x384xf32> to vector<16x384xf32>
    %5 = arith.addf %2, %4 : vector<16x384xf32>
    %cst_5 = arith.constant 0.000000e+00 : f32
    %6 = vector.broadcast %cst_5 : f32 to vector<16x384xf32>
    %7 = arith.maximumf %5, %6 : vector<16x384xf32>
    %8 = arith.truncf %7 : vector<16x384xf32> to vector<16x384xbf16>
    %c0_6 = arith.constant 0 : index
    %c0_7 = arith.constant 0 : index
    %9 = vector.load %arg4[%c0_6, %c0_7] : memref<384x128xbf16, #tpu.memory_space<vmem>>, vector<384x128xbf16>
    %cst_8 = arith.constant dense<0.000000e+00> : vector<16x128xf32>
    %10 = tpu.matmul %8, %9, %cst_8 {dimension_numbers = #tpu.dot_dimension_numbers<[1], [0], [0], [1], [0, 0, 1, 1], [], []>} : vector<16x384xbf16>, vector<384x128xbf16>, vector<16x128xf32> -> vector<16x128xf32>
    %c0_9 = arith.constant 0 : index
    %c0_10 = arith.constant 0 : index
    %11 = vector.load %arg5[%c0_9, %c0_10] : memref<1x128xf32, #tpu.memory_space<vmem>>, vector<1x128xf32>
    %12 = vector.broadcast %11 : vector<1x128xf32> to vector<16x128xf32>
    %13 = arith.addf %10, %12 : vector<16x128xf32>
    %cst_11 = arith.constant 0.000000e+00 : f32
    %14 = vector.broadcast %cst_11 : f32 to vector<16x128xf32>
    %15 = arith.maximumf %13, %14 : vector<16x128xf32>
    %16 = arith.truncf %15 : vector<16x128xf32> to vector<16x128xbf16>
    %c0_12 = arith.constant 0 : index
    %c0_13 = arith.constant 0 : index
    %17 = vector.load %arg6[%c0_12, %c0_13] : memref<128x128xbf16, #tpu.memory_space<vmem>>, vector<128x128xbf16>
    %cst_14 = arith.constant dense<0.000000e+00> : vector<16x128xf32>
    %18 = tpu.matmul %16, %17, %cst_14 {dimension_numbers = #tpu.dot_dimension_numbers<[1], [0], [0], [1], [0, 0, 1, 1], [], []>} : vector<16x128xbf16>, vector<128x128xbf16>, vector<16x128xf32> -> vector<16x128xf32>
    %c0_15 = arith.constant 0 : index
    %c0_16 = arith.constant 0 : index
    %19 = vector.load %arg7[%c0_15, %c0_16] : memref<1x128xf32, #tpu.memory_space<vmem>>, vector<1x128xf32>
    %20 = vector.broadcast %19 : vector<1x128xf32> to vector<16x128xf32>
    %21 = arith.addf %18, %20 : vector<16x128xf32>
    %22 = arith.truncf %21 : vector<16x128xf32> to vector<16x128xbf16>
    %c0_17 = arith.constant 0 : index
    %c0_18 = arith.constant 0 : index
    %23 = vector.load %arg14[%c0_17, %c0_18] : memref<16x128xbf16, #tpu.memory_space<vmem>>, vector<16x128xbf16>
    tpu.vector_store %arg14[%c0_17, %c0_18], %22 {strides = array<i32>} : memref<16x128xbf16, #tpu.memory_space<vmem>>, vector<16x128xbf16>,
    %24 = arith.truncf %21 : vector<16x128xf32> to vector<16x128xbf16>
    %c0_19 = arith.constant 0 : index
    %c0_20 = arith.constant 0 : index
    %25 = vector.load %arg8[%c0_19, %c0_20] : memref<128x128xbf16, #tpu.memory_space<vmem>>, vector<128x128xbf16>
    %cst_21 = arith.constant dense<0.000000e+00> : vector<16x128xf32>
    %26 = tpu.matmul %24, %25, %cst_21 {dimension_numbers = #tpu.dot_dimension_numbers<[1], [0], [0], [1], [0, 0, 1, 1], [], []>} : vector<16x128xbf16>, vector<128x128xbf16>, vector<16x128xf32> -> vector<16x128xf32>
    %c0_22 = arith.constant 0 : index
    %c0_23 = arith.constant 0 : index
    %27 = vector.load %arg9[%c0_22, %c0_23] : memref<1x128xf32, #tpu.memory_space<vmem>>, vector<1x128xf32>
    %28 = vector.broadcast %27 : vector<1x128xf32> to vector<16x128xf32>
    %29 = arith.addf %26, %28 : vector<16x128xf32>
    %cst_24 = arith.constant 0.000000e+00 : f32
    %30 = vector.broadcast %cst_24 : f32 to vector<16x128xf32>
    %31 = arith.maximumf %29, %30 : vector<16x128xf32>
    %32 = arith.truncf %31 : vector<16x128xf32> to vector<16x128xbf16>
    %c0_25 = arith.constant 0 : index
    %c0_26 = arith.constant 0 : index
    %33 = vector.load %arg10[%c0_25, %c0_26] : memref<128x384xbf16, #tpu.memory_space<vmem>>, vector<128x384xbf16>
    %cst_27 = arith.constant dense<0.000000e+00> : vector<16x384xf32>
    %34 = tpu.matmul %32, %33, %cst_27 {dimension_numbers = #tpu.dot_dimension_numbers<[1], [0], [0], [1], [0, 0, 1, 1], [], []>} : vector<16x128xbf16>, vector<128x384xbf16>, vector<16x384xf32> -> vector<16x384xf32>
    %c0_28 = arith.constant 0 : index
    %c0_29 = arith.constant 0 : index
    %35 = vector.load %arg11[%c0_28, %c0_29] : memref<1x384xf32, #tpu.memory_space<vmem>>, vector<1x384xf32>
    %36 = vector.broadcast %35 : vector<1x384xf32> to vector<16x384xf32>
    %37 = arith.addf %34, %36 : vector<16x384xf32>
    %cst_30 = arith.constant 0.000000e+00 : f32
    %38 = vector.broadcast %cst_30 : f32 to vector<16x384xf32>
    %39 = arith.maximumf %37, %38 : vector<16x384xf32>
    %40 = arith.truncf %39 : vector<16x384xf32> to vector<16x384xbf16>
    %c0_31 = arith.constant 0 : index
    %c0_32 = arith.constant 0 : index
    %41 = vector.load %arg12[%c0_31, %c0_32] : memref<384x128xbf16, #tpu.memory_space<vmem>>, vector<384x128xbf16>
    %cst_33 = arith.constant dense<0.000000e+00> : vector<16x128xf32>
    %42 = tpu.matmul %40, %41, %cst_33 {dimension_numbers = #tpu.dot_dimension_numbers<[1], [0], [0], [1], [0, 0, 1, 1], [], []>} : vector<16x384xbf16>, vector<384x128xbf16>, vector<16x128xf32> -> vector<16x128xf32>
    %c0_34 = arith.constant 0 : index
    %c0_35 = arith.constant 0 : index
    %43 = vector.load %arg13[%c0_34, %c0_35] : memref<1x128xf32, #tpu.memory_space<vmem>>, vector<1x128xf32>
    %44 = vector.broadcast %43 : vector<1x128xf32> to vector<16x128xf32>
    %45 = arith.addf %42, %44 : vector<16x128xf32>
    %46 = arith.truncf %45 : vector<16x128xf32> to vector<16x128xbf16>
    %c0_36 = arith.constant 0 : index
    %c0_37 = arith.constant 0 : index
    %47 = vector.load %arg15[%c0_36, %c0_37] : memref<16x128xbf16, #tpu.memory_space<vmem>>, vector<16x128xbf16>
    tpu.vector_store %arg15[%c0_36, %c0_37], %46 {strides = array<i32>} : memref<16x128xbf16, #tpu.memory_space<vmem>>, vector<16x128xbf16>,
    return
  }
  func.func @transform_0(%arg0: i32) -> (i32, i32) {
    %c0_i32 = arith.constant 0 : i32
    %c0_i32_0 = arith.constant 0 : i32
    return %arg0, %c0_i32 : i32, i32
  }
  func.func @transform_1(%arg0: i32) -> (i32, i32) {
    %c0_i32 = arith.constant 0 : i32
    %c0_i32_0 = arith.constant 0 : i32
    %c0_i32_1 = arith.constant 0 : i32
    return %c0_i32, %c0_i32_0 : i32, i32
  }
  func.func @transform_2(%arg0: i32) -> (i32, i32) {
    %c0_i32 = arith.constant 0 : i32
    %c0_i32_0 = arith.constant 0 : i32
    %c0_i32_1 = arith.constant 0 : i32
    return %c0_i32, %c0_i32_0 : i32, i32
  }
  func.func @transform_3(%arg0: i32) -> (i32, i32) {
    %c0_i32 = arith.constant 0 : i32
    %c0_i32_0 = arith.constant 0 : i32
    %c0_i32_1 = arith.constant 0 : i32
    return %c0_i32, %c0_i32_0 : i32, i32
  }
  func.func @transform_4(%arg0: i32) -> (i32, i32) {
    %c0_i32 = arith.constant 0 : i32
    %c0_i32_0 = arith.constant 0 : i32
    %c0_i32_1 = arith.constant 0 : i32
    return %c0_i32, %c0_i32_0 : i32, i32
  }
  func.func @transform_5(%arg0: i32) -> (i32, i32) {
    %c0_i32 = arith.constant 0 : i32
    %c0_i32_0 = arith.constant 0 : i32
    %c0_i32_1 = arith.constant 0 : i32
    return %c0_i32, %c0_i32_0 : i32, i32
  }
  func.func @transform_6(%arg0: i32) -> (i32, i32) {
    %c0_i32 = arith.constant 0 : i32
    %c0_i32_0 = arith.constant 0 : i32
    %c0_i32_1 = arith.constant 0 : i32
    return %c0_i32, %c0_i32_0 : i32, i32
  }
  func.func @transform_7(%arg0: i32) -> (i32, i32) {
    %c0_i32 = arith.constant 0 : i32
    %c0_i32_0 = arith.constant 0 : i32
    %c0_i32_1 = arith.constant 0 : i32
    return %c0_i32, %c0_i32_0 : i32, i32
  }
  func.func @transform_8(%arg0: i32) -> (i32, i32) {
    %c0_i32 = arith.constant 0 : i32
    %c0_i32_0 = arith.constant 0 : i32
    %c0_i32_1 = arith.constant 0 : i32
    return %c0_i32, %c0_i32_0 : i32, i32
  }
  func.func @transform_9(%arg0: i32) -> (i32, i32) {
    %c0_i32 = arith.constant 0 : i32
    %c0_i32_0 = arith.constant 0 : i32
    %c0_i32_1 = arith.constant 0 : i32
    return %c0_i32, %c0_i32_0 : i32, i32
  }
  func.func @transform_10(%arg0: i32) -> (i32, i32) {
    %c0_i32 = arith.constant 0 : i32
    %c0_i32_0 = arith.constant 0 : i32
    %c0_i32_1 = arith.constant 0 : i32
    return %c0_i32, %c0_i32_0 : i32, i32
  }
  func.func @transform_11(%arg0: i32) -> (i32, i32) {
    %c0_i32 = arith.constant 0 : i32
    %c0_i32_0 = arith.constant 0 : i32
    %c0_i32_1 = arith.constant 0 : i32
    return %c0_i32, %c0_i32_0 : i32, i32
  }
  func.func @transform_12(%arg0: i32) -> (i32, i32) {
    %c0_i32 = arith.constant 0 : i32
    %c0_i32_0 = arith.constant 0 : i32
    %c0_i32_1 = arith.constant 0 : i32
    return %c0_i32, %c0_i32_0 : i32, i32
  }
  func.func @transform_13(%arg0: i32) -> (i32, i32) {
    %c0_i32 = arith.constant 0 : i32
    %c0_i32_0 = arith.constant 0 : i32
    return %arg0, %c0_i32 : i32, i32
  }
  func.func @transform_14(%arg0: i32) -> (i32, i32) {
    %c0_i32 = arith.constant 0 : i32
    %c0_i32_0 = arith.constant 0 : i32
    return %arg0, %c0_i32 : i32, i32
  }
}

</mosaic_0001>

<bundles_post_ra>
// kernel: lenet_300_100_forward.1
= control target key start
LH: loop header
LB: loop body
LE: loop exit
PB: predicated region body
PF: predicated region fallthrough
CT: control target
= control target key end

     0   :  { %s3190_s0 = inlined_call_operand.vmem [shape: bf16[32,128], index: 0, kind: input, shape index: {}]   ;;  %s3191_s1 = inlined_call_operand.hbm [shape: bf16[128,384], index: 1, kind: input, shape index: {}]   ;;  %s3192_s2 = inlined_call_operand.vmem [shape: f32[1,384], index: 2, kind: input, shape index: {}]   ;;  %s3193_s3 = inlined_call_operand.hbm [shape: bf16[384,128], index: 3, kind: input, shape index: {}]   ;;  %s3194_s4 = inlined_call_operand.vmem [shape: f32[1,128], index: 4, kind: input, shape index: {}]   ;;  %s3195_s5 = inlined_call_operand.vmem [shape: bf16[128,128], index: 5, kind: input, shape index: {}]   ;;  %s3196_s6 = inlined_call_operand.vmem [shape: f32[1,128], index: 6, kind: input, shape index: {}]   ;;  %s3197_s7 = inlined_call_operand.hbm [shape: bf16[128,128], index: 7, kind: input, shape index: {}]   ;;  %s3198_s8 = inlined_call_operand.vmem [shape: f32[1,128], index: 8, kind: input, shape index: {}]   ;;  %s3199_s9 = inlined_call_operand.hbm [shape: bf16[128,384], index: 9, kind: input, shape index: {}]   ;;  %s3200_s10 = inlined_call_operand.vmem [shape: f32[1,384], index: 10, kind: input, shape index: {}]   ;;  %s3201_s11 = inlined_call_operand.hbm [shape: bf16[384,128], index: 11, kind: input, shape index: {}]   ;;  %s3202_s12 = inlined_call_operand.vmem [shape: f32[1,128], index: 12, kind: input, shape index: {}]   ;;  %s3203_s13 = inlined_call_operand.vmem [shape: bf16[32,128], index: 13, kind: output, shape index: {0}]   ;;  %s3204_s14 = inlined_call_operand.vmem [shape: bf16[32,128], index: 14, kind: output, shape index: {1}]  }
   0x1   :  { %3213 = sst [smem:[#allocation13_spill]] %s3200_s10 }
   0x2   :  { %3214 = sst [smem:[#allocation14_spill]] %s3202_s12 }
   0x3   :  { %3215 = sst [smem:[#allocation15_spill]] %s3204_s14 }
   0x4   :  { %20 = vsyncpa [#allocation3], 0 }
   0x5   :  { %21 = vsyncpa [#allocation5], 0 }
   0x6   :  { %22 = vsyncpa [#allocation8], 0  ;;  %s2877_s29 = smov 0  }
   0x7 LB: > { %s2790_s30 = smov [#allocation4]   ;;  %s3205_s16 = sadd.s32 4294967295, %s2788_s29   ;;  %s2788_s29 = sphi %s2877_s29, %s28_s29  }
   0x8   : > { %s391_s15 = sshll.u32 %s2790_s30, 4  ;;  %p2061_p0 = scmp.ge.s32.totalorder %s2788_s29, 1  ;;  %s2891_s15 = int_to_ptr.vmem [resolvable:$true] %s391_s15 }
   0x9   : > { %p363_p1 = scmp.lt.s32.totalorder %s2788_s29, 3  ;;  %p2887_p2 = scmp.eq.s32.totalorder %s3205_s16, 0 }
   0xa   : > { %s2791_s20 = smov [#allocation7]   ;;  %s2792_s22 = smov [#allocation2]  }
   0xb   : > { %s3216_s17 = scalar_select %p2887_p2, 1, 0 }
   0xc   : > { %p2893_p3 = pnand %p2061_p0, %p363_p1  ;;  %s429_s21 = sshll.u32 %s2791_s20, 4  ;;  %s2905_s21 = int_to_ptr.vmem [resolvable:$true] %s429_s21 }
   0xd   : > { %s375_s23 = sshll.u32 %s2792_s22, 4  ;;  %s2630_s26 = scalar_lea.hbm %s3193_s3, 3072  ;;  %s2907_s23 = int_to_ptr.vmem [resolvable:$true] %s375_s23 }
   0xe   : > { %s3217_s18 = scalar_select %p2893_p3, 1, 0 }
   0xf   : > { %p2455_p4 = pneg %p2893_p3  ;;  %p2631_p6 = scmp.ne.s32.totalorder %s3193_s3, %s2630_s26 }
  0x10   : > { %p2637_p10 = scmp.lt.u32.totalorder %s2630_s26, %s3193_s3 }
  0x11   : > { %p2901_p5 = pnand %p2887_p2, %p2455_p4 }
  0x13   : > { %p2917_p7 = pneg %p2901_p5 }
  0x15   : > { %p2633_p8 = pnand %p2917_p7, %p2631_p6 }
  0x17   : > { %p2634_p9 = pneg %p2633_p8 }
  0x19   : > { %p2639_p11 = pnand %p2637_p10, %p2634_p9 }
  0x1b   : > { %2642 = shalt.err (!%p2639_p11)
}
  0x1c   : > { %s2643_s24 = scalar_lea.vmem %s2891_s15, 3072  ;;  %p2651_p1 = scmp.lt.s32.totalorder %s2891_s15, %s2891_s15 }
  0x1d   : > { %p2644_p12 = scmp.ne.s32.totalorder %s2891_s15, %s2643_s24  ;;  %p2652_p4 = scmp.lt.s32.totalorder %s2643_s24, %s2643_s24 }
  0x1f   : > { %p2646_p13 = pnand %p2644_p12, %p2917_p7  ;;  %p2653_p6 = por %p2652_p4, %p2651_p1 }
  0x21   : > { %p2647_p0 = pneg %p2646_p13 }
  0x23   : > { %p2654_p8 = pnand %p2653_p6, %p2647_p0 }
  0x25   : > { %2657 = shalt.err (!%p2654_p8)
}
  0x26   : > { %s3206_s25 = smov 64   ;;  %s3208_s26 = smov 4  }
  0x27   : > { %2461 = dma.hbm_to_vmem [thread:$0]  (!%p2901_p5), %s3193_s3, 3072, %s2891_s15, [#allocation5], %s3206_s25, %s3206_s25, %s3208_s26  }
  0x28   : > { %s2658_s24 = scalar_lea.hbm %s3199_s9, 3072 }
  0x29   : > { %p2659_p9 = scmp.ne.s32.totalorder %s3199_s9, %s2658_s24  ;;  %p2665_p12 = scmp.lt.u32.totalorder %s2658_s24, %s3199_s9 }
  0x2b   : > { %p2661_p10 = pnand %p2659_p9, %p2917_p7 }
  0x2d   : > { %p2662_p11 = pneg %p2661_p10 }
  0x2f   : > { %p2667_p13 = pnand %p2665_p12, %p2662_p11 }
  0x31   : > { %2670 = shalt.err (!%p2667_p13)
}
  0x32   : > { %s2671_s15 = scalar_lea.vmem %s2905_s21, 3072  ;;  %p2679_p6 = scmp.lt.s32.totalorder %s2905_s21, %s2905_s21 }
  0x33   : > { %p2672_p0 = scmp.ne.s32.totalorder %s2905_s21, %s2671_s15  ;;  %p2680_p8 = scmp.lt.s32.totalorder %s2671_s15, %s2671_s15 }
  0x35   : > { %p2674_p1 = pnand %p2672_p0, %p2917_p7  ;;  %p2681_p9 = por %p2680_p8, %p2679_p6 }
  0x37   : > { %p2675_p4 = pneg %p2674_p1 }
  0x39   : > { %p2682_p10 = pnand %p2681_p9, %p2675_p4 }
  0x3b   : > { %2685 = shalt.err (!%p2682_p10)
}
  0x3c   : > { %s2795_s14 = smov 192   ;;  %s2796_s10 = smov 12  }
  0x3d   : > { %2467 = dma.hbm_to_vmem [thread:$0]  (!%p2901_p5), %s3199_s9, 3072, %s2905_s21, [#allocation8], %s2795_s14, %s2795_s14, %s2796_s10  }
  0x3e   : > { %s2686_s20 = scalar_lea.hbm %s3191_s1, 3072 }
  0x3f   : > { %p2687_p11 = scmp.ne.s32.totalorder %s3191_s1, %s2686_s20  ;;  %p2693_p0 = scmp.lt.u32.totalorder %s2686_s20, %s3191_s1 }
  0x41   : > { %p2689_p12 = pnand %p2687_p11, %p2917_p7 }
  0x43   : > { %p2690_p13 = pneg %p2689_p12 }
  0x45   : > { %p2695_p1 = pnand %p2693_p0, %p2690_p13 }
  0x47   : > { %2698 = shalt.err (!%p2695_p1)
}
  0x48   : > { %s2699_s21 = scalar_lea.vmem %s2907_s23, 3072  ;;  %p2707_p9 = scmp.lt.s32.totalorder %s2907_s23, %s2907_s23 }
  0x49   : > { %p2700_p4 = scmp.ne.s32.totalorder %s2907_s23, %s2699_s21  ;;  %p2708_p10 = scmp.lt.s32.totalorder %s2699_s21, %s2699_s21 }
  0x4b   : > { %p2702_p6 = pnand %p2700_p4, %p2917_p7  ;;  %p2709_p11 = por %p2708_p10, %p2707_p9 }
  0x4d   : > { %p2703_p8 = pneg %p2702_p6 }
  0x4f   : > { %p2710_p12 = pnand %p2709_p11, %p2703_p8 }
  0x51   : > { %2713 = shalt.err (!%p2710_p12)
}
  0x52   : > { %2458 = dma.hbm_to_vmem [thread:$0]  (!%p2901_p5), %s3191_s1, 3072, %s2907_s23, [#allocation3], %s2795_s14, %s2795_s14, %s2796_s10  }
  0x53   : > { %s2797_s16 = smov [#allocation6]   ;;  %s2798_s28 = smov [#allocation9]  }
  0x54   : > { %s413_s27 = sshll.u32 %s2797_s16, 4  ;;  %s445_s20 = sshll.u32 %s2798_s28, 4  ;;  %s414_s27 = int_to_ptr.vmem [resolvable:$true] %s413_s27  ;;  %s2987_s20 = int_to_ptr.vmem [resolvable:$true] %s445_s20 }
  0x55   : > { %s2714_s15 = scalar_lea.hbm %s3197_s7, 1024 }
  0x56   : > { %p2715_p13 = scmp.ne.s32.totalorder %s3197_s7, %s2714_s15  ;;  %p2721_p4 = scmp.lt.u32.totalorder %s2714_s15, %s3197_s7 }
  0x58   : > { %p2717_p0 = pnand %p2715_p13, %p2917_p7 }
  0x5a   : > { %p2718_p1 = pneg %p2717_p0 }
  0x5c   : > { %p2723_p6 = pnand %p2721_p4, %p2718_p1 }
  0x5e   : > { %2726 = shalt.err (!%p2723_p6)
}
  0x5f   : > { %s2727_s14 = scalar_lea.vmem %s414_s27, 1024  ;;  %p2735_p11 = scmp.lt.s32.totalorder %s414_s27, %s414_s27 }
  0x60   : > { %p2728_p8 = scmp.ne.s32.totalorder %s414_s27, %s2727_s14  ;;  %p2736_p12 = scmp.lt.s32.totalorder %s2727_s14, %s2727_s14 }
  0x62   : > { %p2730_p9 = pnand %p2728_p8, %p2917_p7  ;;  %p2737_p2 = por %p2736_p12, %p2735_p11 }
  0x64   : > { %p2731_p10 = pneg %p2730_p9 }
  0x66   : > { %p2738_p3 = pnand %p2737_p2, %p2731_p10 }
  0x68   : > { %2741 = shalt.err (!%p2738_p3)
}
  0x69   : > { %s3220_s26 = smov 4   ;;  %s3221_s10 = smov 64  }
  0x6a   : > { %2464 = dma.hbm_to_vmem [thread:$0]  (!%p2901_p5), %s3197_s7, 1024, %s414_s27, [#allocation5], %s3221_s10, %s3221_s10, %s3220_s26  }
  0x6b   : > { %s2742_s24 = scalar_lea.hbm %s3201_s11, 3072 }
  0x6c   : > { %p2743_p13 = scmp.ne.s32.totalorder %s3201_s11, %s2742_s24  ;;  %p2749_p0 = scmp.lt.u32.totalorder %s2742_s24, %s3201_s11 }
  0x6e   : > { %p2745_p2 = pnand %p2743_p13, %p2917_p7 }
  0x70   : > { %p2746_p3 = pneg %p2745_p2 }
  0x72   : > { %p2751_p1 = pnand %p2749_p0, %p2746_p3 }
  0x74   : > { %2754 = shalt.err (!%p2751_p1)
}
  0x75   : > { %s2755_s27 = scalar_lea.vmem %s2987_s20, 3072  ;;  %p2763_p9 = scmp.lt.s32.totalorder %s2987_s20, %s2987_s20 }
  0x76   : > { %p2756_p4 = scmp.ne.s32.totalorder %s2987_s20, %s2755_s27  ;;  %p2764_p10 = scmp.lt.s32.totalorder %s2755_s27, %s2755_s27 }
  0x78   : > { %p2758_p6 = pnand %p2756_p4, %p2917_p7  ;;  %p2765_p11 = por %p2764_p10, %p2763_p9 }
  0x7a   : > { %p2759_p8 = pneg %p2758_p6 }
  0x7c   : > { %p2766_p12 = pnand %p2765_p11, %p2759_p8 }
  0x7e   : > { %2769 = shalt.err (!%p2766_p12)
}
  0x7f   : > { %2470 = dma.hbm_to_vmem [thread:$0]  (!%p2901_p5), %s3201_s11, 3072, %s2987_s20, [#allocation8], %s3221_s10, %s3221_s10, %s3220_s26  }
  0x80   : > { %p3222_p13 = scmp.ne.s32.totalorder %s3217_s18, 0 }
  0x81   : > { %p3223_p7 = scmp.ne.s32.totalorder (!%p3222_p13), %s3216_s17, 0 }
  0x82   : > { %473 = sbr.rel (%p3222_p13) target bundleno = 1507 (0x5e3), region = 72 }
  0x89   : > { %2775 = dma.done.wait (%p3223_p7), [#allocation3], 3072  }
  0x8a   : > { %2777 = vsyncadd (%p3223_p7), [#allocation3], 4294964224 }
  0x8b   : > { %2779 = dma.done.wait (%p3223_p7), [#allocation5], 4096  }
  0x8c   : > { %2781 = vsyncadd (%p3223_p7), [#allocation5], 4294963200 }
  0x8d   : > { %2783 = dma.done.wait (%p3223_p7), [#allocation8], 6144  }
  0x8e   : > { %2785 = vsyncadd (%p3223_p7), [#allocation8], 4294961152  ;;  %v2799_v0 = vmov 0.0   ;;  %v2800_v1 = vmov 0   ;;  %vm2801_vm0 = vmmov 0   ;;  %s3224_s18 = sadd.s32 4294967295, %s2788_s29   ;;  %v595_v51 = vlaneseq }
  0x8f   : > { %2315 = vmatprep.subr.bf16.mxu1 %v2799_v0  ;;  %776 = vmatprep.mubr.bf16.mxu0 %v2800_v1  ;;  %v2501_v2 = vld [vmem:[#allocation2 + $0x4] ss:$12 sps:$4 sm:$0xff]   ;;  %v2503_v3 = vld [vmem:[#allocation2] ss:$12 sps:$4 sm:$0xff]   ;;  %v2504_v4 = vld [vmem:[#allocation2 + $0x8] ss:$12 sps:$4 sm:$0xff]  }
  0x90   : > { %2331 = vmatprep.mubr.msk.bf16.mxu1 %vm2801_vm0, %v2799_v0  ;;  %744 = vmatprep.subr.bf16.mxu0 %v2501_v2  ;;  %s2074_s19 = sshll.u32 %s3224_s18, 1  ;;  %v2505_v5 = vld [vmem:[#allocation2 + $0x1c] ss:$12 sps:$4 sm:$0xff]   ;;  %v2507_v6 = vld [vmem:[#allocation2 + $0x18] ss:$12 sps:$4 sm:$0xff]   ;;  %v2540_v33 = vld [vmem:[#allocation4 + $0x50] sm:$0xff]  }
  0x91   : > { %745 = vmatpush1.bf16.msra.mxu0 %v2503_v3  ;;  %2316 = vmatpush3.bf16.msra.mxu1 %v2504_v4  ;;  %v2508_v7 = vld [vmem:[#allocation2 + $0x20] ss:$12 sps:$4 sm:$0xff]   ;;  %p541_p5 = scmp.lt.s32.totalorder %s2074_s19, 3  ;;  %v2511_v9 = vld [vmem:[#allocation2 + $0x30] ss:$12 sps:$4 sm:$0xff]   ;;  %v3081_v52 = vshrl.u32 %v595_v51, 7 }
  0x92   : > { %746 = vmatprep.subr.bf16.mxu0 %v2505_v5  ;;  %2317 = vmatprep.subr.bf16.mxu1 %v2799_v0  ;;  %v2509_v8 = vld [vmem:[#allocation2 + $0x34] ss:$12 sps:$4 sm:$0xff]   ;;  %v2512_v10 = vld [vmem:[#allocation2 + $0x38] ss:$12 sps:$4 sm:$0xff]   ;;  %v2516_v13 = vld [vmem:[#allocation2 + $0x50] ss:$12 sps:$4 sm:$0xff]  }
  0x93   : > { %v2513_v11 = vld [vmem:[#allocation2 + $0x4c] ss:$12 sps:$4 sm:$0xff]   ;;  %s3229_s19 = smov (!%p541_p5, %s2074_s19), 3  ;;  %v2515_v12 = vld [vmem:[#allocation2 + $0x48] ss:$12 sps:$4 sm:$0xff]   ;;  %v2534_v26 = vld [vmem:[#allocation4 + $0x40] sm:$0xff]  }
  0x94   : > { %v2517_v14 = vld [vmem:[#allocation2 + $0x64] ss:$12 sps:$4 sm:$0xff]   ;;  %v2519_v15 = vld [vmem:[#allocation2 + $0x60] ss:$12 sps:$4 sm:$0xff]   ;;  %s3059_s17 = sshll.u32 %s3229_s19, 2  ;;  %v2543_v36 = vld [vmem:[#allocation4 + $0x58] sm:$0xff]  }
  0x95   : > { %747 = vmatpush1.bf16.msra.mxu0 %v2507_v6  ;;  %2318 = vmatpush3.bf16.msra.mxu1 %v2508_v7  ;;  %v2520_v16 = vld [vmem:[#allocation2 + $0x68] ss:$12 sps:$4 sm:$0xff]   ;;  %s544_s26 = scalar_lea.vmem %s3190_s0, %s3059_s17  ;;  %v2523_v18 = vld [vmem:[#allocation2 + $0x78] ss:$12 sps:$4 sm:$0xff]   ;;  %v2524_v19 = vld [vmem:[#allocation2 + $0x80] ss:$12 sps:$4 sm:$0xff]   ;;  %s550_s25 = scalar_lea.vmem %s3203_s13, %s3059_s17 }
  0x96   : > { %748 = vmatprep.subr.bf16.mxu0 %v2509_v8  ;;  %2319 = vmatprep.subr.bf16.mxu1 %v2799_v0  ;;  %v2521_v17 = vld [vmem:[#allocation2 + $0x7c] ss:$12 sps:$4 sm:$0xff]   ;;  %v2525_v20 = vld [vmem:[#allocation2 + $0x94] ss:$12 sps:$4 sm:$0xff]   ;;  %v2528_v22 = vld [vmem:[#allocation2 + $0x98] ss:$12 sps:$4 sm:$0xff]  }
  0x97   : > { %v2527_v21 = vld [vmem:[#allocation2 + $0x90] ss:$12 sps:$4 sm:$0xff]   ;;  %v2529_v23 = vld [vmem:[#allocation2 + $0xac] ss:$12 sps:$4 sm:$0xff]   ;;  %v2531_v24 = vld [vmem:[#allocation2 + $0xa8] ss:$12 sps:$4 sm:$0xff]  }
  0x98   : > { %v2532_v25 = vld [vmem:[#allocation2 + $0xb0] ss:$12 sps:$4 sm:$0xff]   ;;  %v2533_v27 = vld [vmem:[%s544_s26] sm:$0xff]   ;;  %v2537_v30 = vld [vmem:[#allocation4 + $0x48] sm:$0xff]   ;;  %v597_v53 = vsub.s32 0, %v3081_v52  ;;  %v601_v55 = vsub.s32 1, %v3081_v52 }
  0x99   : > { %749 = vmatpush1.bf16.msra.mxu0 %v2511_v9  ;;  %2320 = vmatpush3.bf16.msra.mxu1 %v2512_v10  ;;  %v2535_v28 = vld [vmem:[#allocation4] sm:$0xff]   ;;  %v2538_v31 = vld [vmem:[#allocation4 + $0x8] sm:$0xff]   ;;  %v2541_v34 = vld [vmem:[#allocation4 + $0x10] sm:$0xff]   ;;  %v605_v56 = vsub.s32 2, %v3081_v52  ;;  %s3225_s18 = sld [smem:[#allocation13_spill]]  ;;  %s3226_s20 = sld [smem:[#allocation14_spill]] }
  0x9a   : > { %750 = vmatprep.subr.bf16.mxu0 %v2513_v11  ;;  %2321 = vmatprep.subr.bf16.mxu1 %v2799_v0  ;;  %v2536_v29 = vld [vmem:[#allocation4 + $0x80] sm:$0xff]   ;;  %v2539_v32 = vld [vmem:[#allocation4 + $0x88] sm:$0xff]   ;;  %v2542_v35 = vld [vmem:[#allocation4 + $0x90] sm:$0xff]   ;;  %s3227_s16 = sld [smem:[#allocation15_spill]] }
  0x9b   : > { %v2544_v37 = vld [vmem:[#allocation4 + $0x18] sm:$0xff]   ;;  %v2546_v39 = vld [vmem:[#allocation4 + $0x60] sm:$0xff]   ;;  %v2549_v42 = vld [vmem:[#allocation4 + $0x68] sm:$0xff]  }
  0x9c   : > { %v2545_v38 = vld [vmem:[#allocation4 + $0x98] sm:$0xff]   ;;  %v2547_v40 = vld [vmem:[#allocation4 + $0x20] sm:$0xff]   ;;  %v2550_v43 = vld [vmem:[#allocation4 + $0x28] sm:$0xff]  }
  0x9d   : > { %751 = vmatpush1.bf16.msra.mxu0 %v2515_v12  ;;  %2322 = vmatpush3.bf16.msra.mxu1 %v2516_v13  ;;  %v2548_v41 = vld [vmem:[#allocation4 + $0xa0] sm:$0xff]   ;;  %v2551_v44 = vld [vmem:[#allocation4 + $0xa8] sm:$0xff]   ;;  %v2552_v45 = vld [vmem:[#allocation4 + $0x70] sm:$0xff]  }
  0x9e   : > { %752 = vmatprep.subr.bf16.mxu0 %v2517_v14  ;;  %2323 = vmatprep.subr.bf16.mxu1 %v2799_v0  ;;  %v2553_v46 = vld [vmem:[#allocation4 + $0x30] sm:$0xff]   ;;  %v2555_v48 = vld [vmem:[#allocation4 + $0x78] sm:$0xff]   ;;  %v593_v54 = vld [vmem:[%s3192_s2] sm:$0x7] }
  0x9f   : > { %v2554_v47 = vld [vmem:[#allocation4 + $0xb0] sm:$0xff]   ;;  %v2556_v49 = vld [vmem:[#allocation4 + $0x38] sm:$0xff]   ;;  %v598_v57 = vrot.slane %v593_v54, %v597_v53  ;;  %v602_v58 = vrot.slane %v593_v54, %v601_v55  ;;  %v606_v59 = vrot.slane %v593_v54, %v605_v56 }
  0xa0   : > { %v2557_v50 = vld [vmem:[#allocation4 + $0xb8] sm:$0xff]   ;;  %s556_s28 = scalar_lea.vmem %s3227_s16, %s3059_s17 }
  0xa1   : > { %753 = vmatpush1.bf16.msra.mxu0 %v2519_v15  ;;  %2324 = vmatpush3.bf16.msra.mxu1 %v2520_v16 }
  0xa2   : > { %754 = vmatprep.subr.bf16.mxu0 %v2521_v17  ;;  %2325 = vmatprep.subr.bf16.mxu1 %v2799_v0 }
  0xa5   : > { %755 = vmatpush1.bf16.msra.mxu0 %v2523_v18  ;;  %2326 = vmatpush3.bf16.msra.mxu1 %v2524_v19 }
  0xa6   : > { %756 = vmatprep.subr.bf16.mxu0 %v2525_v20  ;;  %2327 = vmatprep.subr.bf16.mxu1 %v2799_v0 }
  0xa9   : > { %757 = vmatpush1.bf16.msra.mxu0 %v2527_v21  ;;  %2328 = vmatpush3.bf16.msra.mxu1 %v2528_v22  ;;  %v2558_v21 = vld [vmem:[%s3195_s5] sm:$0xff]   ;;  %v2559_v22 = vld [vmem:[%s3195_s5 + $0x8] sm:$0xff]  }
  0xaa   : > { %758 = vmatprep.subr.bf16.mxu0 %v2529_v23  ;;  %2329 = vmatprep.subr.bf16.mxu1 %v2799_v0  ;;  %v2560_v23 = vld [vmem:[%s3195_s5 + $0x10] sm:$0xff]  }
  0xad   : > { %759 = vmatpush1.bf16.msra.mxu0 %v2531_v24  ;;  %2330 = vmatpush3.bf16.msra.mxu1 %v2532_v25  ;;  %v2561_v24 = vld [vmem:[%s3195_s5 + $0x18] sm:$0xff]   ;;  %v2562_v25 = vld [vmem:[%s3195_s5 + $0x20] sm:$0xff]  }
  0xae   : > { %2226 = vmatprep.subr.bf16.mxu0 %v2534_v26  ;;  %2335 = vmatprep.subr.bf16.mxu1 %v2799_v0  ;;  %v2563_v26 = vld [vmem:[%s3195_s5 + $0x28] sm:$0xff]  }
  0xb0   : > { %777 = vmatmul.mubr.bf16.vlgmr.msra.gmra.mrb[0].mxu0 %v2533_v27  ;;  %2332 = vmatmul.mubr.bf16.vlgmr.msra.gmra.mrb[0].mxu1 %v2533_v27  ;;  %v2564_v27 = vld [vmem:[%s3195_s5 + $0x30] sm:$0xff]  }
  0xb1   : > { %2227 = vmatpush3.bf16.msra.mxu0 %v2535_v28  ;;  %2336 = vmatpush3.bf16.msra.mxu1 %v2536_v29  ;;  %v2565_v28 = vld [vmem:[%s3195_s5 + $0x38] sm:$0xff]   ;;  %v2566_v29 = vld [vmem:[#allocation6] sm:$0xff]  }
  0xb2   : > { %2228 = vmatprep.subr.bf16.mxu0 %v2537_v30  ;;  %2337 = vmatprep.subr.bf16.mxu1 %v2799_v0  ;;  %v2567_v30 = vld [vmem:[#allocation6 + $0x8] sm:$0xff]  }
  0xb3   : > { %2351 = vmatprep.mubr.msk.bf16.mxu1 %vm2801_vm0, %v2799_v0 }
  0xb5   : > { %2229 = vmatpush3.bf16.msra.mxu0 %v2538_v31  ;;  %2338 = vmatpush3.bf16.msra.mxu1 %v2539_v32  ;;  %v2568_v31 = vld [vmem:[#allocation6 + $0x10] sm:$0xff]   ;;  %v2569_v32 = vld [vmem:[#allocation6 + $0x18] sm:$0xff]  }
  0xb6   : > { %2230 = vmatprep.subr.bf16.mxu0 %v2540_v33  ;;  %2339 = vmatprep.subr.bf16.mxu1 %v2799_v0  ;;  %v2570_v33 = vld [vmem:[#allocation6 + $0x20] sm:$0xff]  }
  0xb9   : > { %2231 = vmatpush3.bf16.msra.mxu0 %v2541_v34  ;;  %2340 = vmatpush3.bf16.msra.mxu1 %v2542_v35  ;;  %v2571_v34 = vld [vmem:[#allocation6 + $0x28] sm:$0xff]  }
  0xba   : > { %2232 = vmatprep.subr.bf16.mxu0 %v2543_v36  ;;  %2341 = vmatprep.subr.bf16.mxu1 %v2799_v0 }
  0xbd   : > { %2233 = vmatpush3.bf16.msra.mxu0 %v2544_v37  ;;  %2342 = vmatpush3.bf16.msra.mxu1 %v2545_v38  ;;  %v2105_v38 = vld [vmem:[%s3194_s4] ss:$0 sm:$0xff] }
  0xbe   : > { %2234 = vmatprep.subr.bf16.mxu0 %v2546_v39  ;;  %2343 = vmatprep.subr.bf16.mxu1 %v2799_v0 }
  0xc1   : > { %2235 = vmatpush3.bf16.msra.mxu0 %v2547_v40  ;;  %2344 = vmatpush3.bf16.msra.mxu1 %v2548_v41 }
  0xc2   : > { %2236 = vmatprep.subr.bf16.mxu0 %v2549_v42  ;;  %2345 = vmatprep.subr.bf16.mxu1 %v2799_v0 }
  0xc5   : > { %2237 = vmatpush3.bf16.msra.mxu0 %v2550_v43  ;;  %2346 = vmatpush3.bf16.msra.mxu1 %v2551_v44 }
  0xc6   : > { %2347 = vmatprep.subr.bf16.mxu1 %v2799_v0  ;;  %2238 = vmatprep.subr.bf16.mxu0 %v2552_v45 }
  0xc9   : > { %2239 = vmatpush3.bf16.msra.mxu0 %v2553_v46  ;;  %2348 = vmatpush3.bf16.msra.mxu1 %v2554_v47 }
  0xca   : > { %2349 = vmatprep.subr.bf16.mxu1 %v2799_v0  ;;  %2240 = vmatprep.subr.bf16.mxu0 %v2555_v48 }
  0xcd   : > { %2241 = vmatpush3.bf16.msra.mxu0 %v2556_v49  ;;  %2350 = vmatpush3.bf16.msra.mxu1 %v2557_v50 }
  0xce   : > { %2355 = vmatprep.subr.bf16.mxu0 %v2799_v0  ;;  %2375 = vmatprep.subr.bf16.mxu1 %v2799_v0 }
 0x183   : > { %v778_v60 = vpop.f32.mrb[0].mxu0  ;;  %v821_v63 = vpop.f32.mrb[0].mxu1 }
 0x184   : > { %v779_v61 = vadd.f32 %v778_v60, %v598_v57  ;;  %v780_v62 = vpop.f32.mrb[1].mxu0  ;;  %v822_v4 = vadd.f32 %v821_v63, %v606_v59  ;;  %v2333_v5 = vpop.f32.mrb[1].mxu1  ;;  %v2576_v60 = vld [vmem:[#allocation7 + $0x4] ss:$12 sps:$4 sm:$0xff]   ;;  %v2584_v63 = vld [vmem:[#allocation7 + $0x34] ss:$12 sps:$4 sm:$0xff]  }
 0x185   : > { %v781_v2 = vadd.f32 %v780_v62, %v602_v58  ;;  %v782_v3 = vpop.f32.mrb[2].mxu0  ;;  %v824_v8 = vpop.f32.mrb[2].mxu1  ;;  %v2578_v62 = vld [vmem:[#allocation7 + $0x18] ss:$12 sps:$4 sm:$0xff]   ;;  %v2590_v5 = vld [vmem:[#allocation7 + $0x60] ss:$12 sps:$4 sm:$0xff]  }
 0x186   : > { %v783_v6 = vadd.f32 %v782_v3, %v598_v57  ;;  %v784_v7 = vpop.f32.mrb[3].mxu0  ;;  %v830_v9 = vmax.f32 %v822_v4, 0.0  ;;  %v825_v11 = vadd.f32 %v824_v8, %v606_v59  ;;  %v2334_v12 = vpop.f32.mrb[3].mxu1  ;;  %v828_v13 = vmax.f32 %v779_v61, 0.0  ;;  %v2572_v57 = vld [vmem:[#allocation6 + $0x30] sm:$0xff]  }
 0x187   : > { %v785_v10 = vadd.f32 %v784_v7, %v602_v58  ;;  %v829_v15 = vmax.f32 %v781_v2, 0.0  ;;  %v2573_v58 = vld [vmem:[#allocation6 + $0x38] sm:$0xff]   ;;  %v2574_v59 = vld [vmem:[#allocation7] ss:$12 sps:$4 sm:$0xff]   ;;  %v2586_v3 = vld [vmem:[#allocation7 + $0x48] ss:$12 sps:$4 sm:$0xff]  }
 0x188   : > { %v831_v14 = vmax.f32 %v783_v6, 0.0  ;;  %v833_v17 = vmax.f32 %v825_v11, 0.0  ;;  %v2580_v61 = vld [vmem:[#allocation7 + $0x1c] ss:$12 sps:$4 sm:$0xff]   ;;  %v2592_v4 = vld [vmem:[#allocation7 + $0x64] ss:$12 sps:$4 sm:$0xff]  }
 0x189   : > { %v832_v16 = vmax.f32 %v785_v10, 0.0  ;;  %v2582_v2 = vld [vmem:[#allocation7 + $0x30] ss:$12 sps:$4 sm:$0xff]   ;;  %v2594_v7 = vld [vmem:[#allocation7 + $0x78] ss:$12 sps:$4 sm:$0xff]  }
 0x18a   : > { %v834_v18 = vpack.c.bf16 %v831_v14, %v828_v13  ;;  %v836_v20 = vpack.c.bf16 %v833_v17, %v830_v9  ;;  %v2596_v6 = vld [vmem:[#allocation7 + $0x7c] ss:$12 sps:$4 sm:$0xff]   ;;  %v2130_v8 = vld [vmem:[%s3196_s6] ss:$0 sm:$0xff] }
 0x18b   : > { %v835_v19 = vpack.c.bf16 %v832_v16, %v829_v15  ;;  %v2577_v15 = vld [vmem:[#allocation7 + $0x8] ss:$12 sps:$4 sm:$0xff]   ;;  %v2581_v17 = vld [vmem:[#allocation7 + $0x20] ss:$12 sps:$4 sm:$0xff]  }
 0x18c   : > { %2352 = vmatmul.mubr.bf16.vlgmr.msra.gmra.mrb[4].mxu1 %v836_v20  ;;  %v2593_v20 = vld [vmem:[#allocation7 + $0x68] ss:$12 sps:$4 sm:$0xff]  }
 0x18d   : > { %1068 = vmatprep.mubr.bf16.mxu0 %v835_v19  ;;  %2391 = vmatprep.mubr.msk.bf16.mxu1 %vm2801_vm0, %v2799_v0  ;;  %v2589_v19 = vld [vmem:[#allocation7 + $0x50] ss:$12 sps:$4 sm:$0xff]  }
 0x18e   : > { %1069 = vmatmul.mubr.bf16.vlgmr.msra.gmra.mrb[4].mxu0 %v834_v18  ;;  %2376 = vmatpush3.bf16.msra.mxu1 %v2566_v29  ;;  %v2585_v18 = vld [vmem:[#allocation7 + $0x38] ss:$12 sps:$4 sm:$0xff]   ;;  %v2141_v29 = vld [vmem:[%s3198_s8] ss:$0 sm:$0xff] }
 0x18f   : > { %2356 = vmatpush3.bf16.msra.mxu0 %v2558_v21  ;;  %2371 = vmatprep.mubr.msk.bf16.mxu0 %vm2801_vm0, %v2799_v0  ;;  %v2597_v21 = vld [vmem:[#allocation7 + $0x80] ss:$12 sps:$4 sm:$0xff]  }
 0x190   : > { %2357 = vmatprep.subr.bf16.mxu0 %v2799_v0  ;;  %2377 = vmatprep.subr.bf16.mxu1 %v2799_v0 }
 0x192   : > { %2378 = vmatpush3.bf16.msra.mxu1 %v2567_v30 }
 0x193   : > { %2358 = vmatpush3.bf16.msra.mxu0 %v2559_v22  ;;  %2379 = vmatprep.subr.bf16.mxu1 %v2799_v0  ;;  %v2600_v22 = vld [vmem:[#allocation7 + $0x94] ss:$12 sps:$4 sm:$0xff]  }
 0x194   : > { %2359 = vmatprep.subr.bf16.mxu0 %v2799_v0 }
 0x196   : > { %2380 = vmatpush3.bf16.msra.mxu1 %v2568_v31 }
 0x197   : > { %2360 = vmatpush3.bf16.msra.mxu0 %v2560_v23  ;;  %2381 = vmatprep.subr.bf16.mxu1 %v2799_v0  ;;  %v2598_v23 = vld [vmem:[#allocation7 + $0x90] ss:$12 sps:$4 sm:$0xff]  }
 0x198   : > { %2361 = vmatprep.subr.bf16.mxu0 %v2799_v0 }
 0x19a   : > { %2382 = vmatpush3.bf16.msra.mxu1 %v2569_v32 }
 0x19b   : > { %2362 = vmatpush3.bf16.msra.mxu0 %v2561_v24  ;;  %2383 = vmatprep.subr.bf16.mxu1 %v2799_v0  ;;  %v2601_v24 = vld [vmem:[#allocation7 + $0x98] ss:$12 sps:$4 sm:$0xff]  }
 0x19c   : > { %2363 = vmatprep.subr.bf16.mxu0 %v2799_v0 }
 0x19e   : > { %2384 = vmatpush3.bf16.msra.mxu1 %v2570_v33 }
 0x19f   : > { %2364 = vmatpush3.bf16.msra.mxu0 %v2562_v25  ;;  %2385 = vmatprep.subr.bf16.mxu1 %v2799_v0  ;;  %v2604_v25 = vld [vmem:[#allocation7 + $0xac] ss:$12 sps:$4 sm:$0xff]  }
 0x1a0   : > { %2365 = vmatprep.subr.bf16.mxu0 %v2799_v0 }
 0x1a2   : > { %2386 = vmatpush3.bf16.msra.mxu1 %v2571_v34 }
 0x1a3   : > { %2366 = vmatpush3.bf16.msra.mxu0 %v2563_v26  ;;  %2387 = vmatprep.subr.bf16.mxu1 %v2799_v0  ;;  %v2602_v26 = vld [vmem:[#allocation7 + $0xa8] ss:$12 sps:$4 sm:$0xff]  }
 0x1a4   : > { %2367 = vmatprep.subr.bf16.mxu0 %v2799_v0 }
 0x1a6   : > { %2388 = vmatpush3.bf16.msra.mxu1 %v2572_v57  ;;  %v2622_v57 = vld [vmem:[#allocation9 + $0x68] sm:$0xff]  }
 0x1a7   : > { %2368 = vmatpush3.bf16.msra.mxu0 %v2564_v27  ;;  %2389 = vmatprep.subr.bf16.mxu1 %v2799_v0  ;;  %v2605_v27 = vld [vmem:[#allocation7 + $0xb0] ss:$12 sps:$4 sm:$0xff]  }
 0x1a8   : > { %2369 = vmatprep.subr.bf16.mxu0 %v2799_v0 }
 0x1aa   : > { %2390 = vmatpush3.bf16.msra.mxu1 %v2573_v58  ;;  %v2621_v58 = vld [vmem:[#allocation9 + $0xa8] sm:$0xff]  }
 0x1ab   : > { %2370 = vmatpush3.bf16.msra.mxu0 %v2565_v28  ;;  %2395 = vmatprep.subr.bf16.mxu1 %v2799_v0  ;;  %v2607_v28 = vld [vmem:[#allocation9 + $0x40] sm:$0xff]  }
 0x1ac   : > { %1535 = vmatprep.subr.bf16.mxu0 %v2576_v60  ;;  %v2624_v60 = vld [vmem:[#allocation9 + $0xb0] sm:$0xff]  }
 0x25f   : > { %v1111_v35 = vpop.f32.mrb[4].mxu1 }
 0x260   : > { %v2353_v37 = vpop.f32.mrb[5].mxu1 }
 0x261   : > { %v2242_v36 = vpop.f32.mrb[4].mxu0  ;;  %v1114_v40 = vpop.f32.mrb[6].mxu1 }
 0x262   : > { %v2243_v39 = vpop.f32.mrb[5].mxu0  ;;  %v2354_v43 = vpop.f32.mrb[7].mxu1 }
 0x263   : > { %v2244_v41 = vadd.f32 %v2243_v39, %v2242_v36  ;;  %v2245_v42 = vpop.f32.mrb[6].mxu0  ;;  %v2608_v39 = vld [vmem:[#allocation9] sm:$0xff]   ;;  %v2611_v43 = vld [vmem:[#allocation9 + $0x8] sm:$0xff]  }
 0x264   : > { %v2246_v44 = vpop.f32.mrb[7].mxu0 }
 0x265   : > { %v1071_v45 = vadd.f32 %v2244_v41, %v2105_v38  ;;  %v2247_v46 = vadd.f32 %v2246_v44, %v2245_v42  ;;  %v2610_v41 = vld [vmem:[#allocation9 + $0x48] sm:$0xff]   ;;  %v2613_v44 = vld [vmem:[#allocation9 + $0x50] sm:$0xff]  }
 0x266   : > { %v2609_v42 = vld [vmem:[#allocation9 + $0x88] sm:$0xff]  }
 0x267   : > { %v1112_v47 = vadd.f32 %v1111_v35, %v1071_v45  ;;  %v1074_v48 = vadd.f32 %v2247_v46, %v2105_v38  ;;  %v2606_v38 = vld [vmem:[#allocation9 + $0x80] sm:$0xff]   ;;  %v2612_v45 = vld [vmem:[#allocation9 + $0x90] sm:$0xff]  }
 0x268   : > { %v2614_v46 = vld [vmem:[#allocation9 + $0x10] sm:$0xff]  }
 0x269   : > { %v1115_v49 = vadd.f32 %v1114_v40, %v1074_v48  ;;  %v1118_v50 = vmax.f32 %v1112_v47, 0.0  ;;  %v2616_v47 = vld [vmem:[#allocation9 + $0x58] sm:$0xff]  }
 0x26a   : > { %v2615_v48 = vld [vmem:[#allocation9 + $0x98] sm:$0xff]  }
 0x26b   : > { %v1119_v51 = vmax.f32 %v1115_v49, 0.0  ;;  %v2617_v49 = vld [vmem:[#allocation9 + $0x18] sm:$0xff]  }
 0x26d   : > { %v1120_v54 = vpack.c.bf16 %v1119_v51, %v1118_v50  ;;  %v2619_v50 = vld [vmem:[#allocation9 + $0x60] sm:$0xff]  }
 0x26e   : > { %v2618_v51 = vld [vmem:[#allocation9 + $0xa0] sm:$0xff]  }
 0x26f   : > { %2372 = vmatmul.mubr.bf16.vlgmr.msra.gmra.mrb[8].mxu0 %v1120_v54  ;;  %v2620_v54 = vld [vmem:[#allocation9 + $0x20] sm:$0xff]  }
 0x270   : > { %1567 = vmatprep.mubr.bf16.mxu0 %v2800_v1  ;;  %1536 = vmatpush1.bf16.msra.mxu0 %v2574_v59  ;;  %v2588_v1 = vld [vmem:[#allocation7 + $0x4c] ss:$12 sps:$4 sm:$0xff]  }
 0x271   : > { %1537 = vmatprep.subr.bf16.mxu0 %v2580_v61  ;;  %v2623_v59 = vld [vmem:[#allocation9 + $0x28] sm:$0xff]   ;;  %v2625_v61 = vld [vmem:[#allocation9 + $0x70] sm:$0xff]  }
 0x274   : > { %1538 = vmatpush1.bf16.msra.mxu0 %v2578_v62  ;;  %v2626_v62 = vld [vmem:[#allocation9 + $0x30] sm:$0xff]  }
 0x275   : > { %1539 = vmatprep.subr.bf16.mxu0 %v2584_v63  ;;  %v2627_v63 = vld [vmem:[#allocation9 + $0xb8] sm:$0xff]  }
 0x278   : > { %1540 = vmatpush1.bf16.msra.mxu0 %v2582_v2  ;;  %v2628_v2 = vld [vmem:[#allocation9 + $0x78] sm:$0xff]  }
 0x279   : > { %1541 = vmatprep.subr.bf16.mxu0 %v2588_v1  ;;  %v2629_v1 = vld [vmem:[#allocation9 + $0x38] sm:$0xff]  }
 0x27c   : > { %1542 = vmatpush1.bf16.msra.mxu0 %v2586_v3  ;;  %v1390_v3 = vld [vmem:[%s3225_s18] sm:$0x7] }
 0x27d   : > { %1543 = vmatprep.subr.bf16.mxu0 %v2592_v4  ;;  %v1395_v4 = vrot.slane %v1390_v3, %v597_v53 }
 0x280   : > { %1544 = vmatpush1.bf16.msra.mxu0 %v2590_v5  ;;  %v1403_v5 = vrot.slane %v1390_v3, %v605_v56 }
 0x281   : > { %1545 = vmatprep.subr.bf16.mxu0 %v2596_v6 }
 0x284   : > { %1546 = vmatpush1.bf16.msra.mxu0 %v2594_v7 }
 0x285   : > { %1547 = vmatprep.subr.bf16.mxu0 %v2600_v22 }
 0x288   : > { %1548 = vmatpush1.bf16.msra.mxu0 %v2598_v23 }
 0x289   : > { %1549 = vmatprep.subr.bf16.mxu0 %v2604_v25 }
 0x28c   : > { %1550 = vmatpush1.bf16.msra.mxu0 %v2602_v26 }
 0x28d   : > { %2284 = vmatprep.subr.bf16.mxu0 %v2607_v28 }
 0x342   : > { %v1226_v9 = vpop.f32.mrb[8].mxu0 }
 0x343   : > { %v2373_v10 = vpop.f32.mrb[9].mxu0  ;;  %v1227_v12 = vadd.f32 %v2130_v8, %v1226_v9 }
 0x344   : > { %v1229_v11 = vpop.f32.mrb[10].mxu0 }
 0x345   : > { %v1230_v13 = vadd.f32 %v2130_v8, %v1229_v11  ;;  %v2374_v14 = vpop.f32.mrb[11].mxu0 }
 0x347   : > { %v1233_v16 = vpack.c.bf16 %v1230_v13, %v1227_v12 }
 0x349   : > { %2211 = vst [vmem:[%s550_s25] sm:$0xff] %v1233_v16   ;;  %2392 = vmatmul.mubr.bf16.vlgmr.msra.gmra.mrb[8].mxu1 %v1233_v16 }
 0x34a   : > { %2396 = vmatpush3.bf16.msra.mxu1 %v2577_v15  ;;  %2411 = vmatprep.mubr.msk.bf16.mxu1 %vm2801_vm0, %v2799_v0 }
 0x34b   : > { %2397 = vmatprep.subr.bf16.mxu1 %v2799_v0 }
 0x34e   : > { %2398 = vmatpush3.bf16.msra.mxu1 %v2581_v17 }
 0x34f   : > { %2399 = vmatprep.subr.bf16.mxu1 %v2799_v0 }
 0x352   : > { %2400 = vmatpush3.bf16.msra.mxu1 %v2585_v18 }
 0x353   : > { %2401 = vmatprep.subr.bf16.mxu1 %v2799_v0 }
 0x356   : > { %2402 = vmatpush3.bf16.msra.mxu1 %v2589_v19 }
 0x357   : > { %2403 = vmatprep.subr.bf16.mxu1 %v2799_v0 }
 0x35a   : > { %2404 = vmatpush3.bf16.msra.mxu1 %v2593_v20 }
 0x35b   : > { %2405 = vmatprep.subr.bf16.mxu1 %v2799_v0 }
 0x35e   : > { %2406 = vmatpush3.bf16.msra.mxu1 %v2597_v21 }
 0x35f   : > { %2407 = vmatprep.subr.bf16.mxu1 %v2799_v0 }
 0x362   : > { %2408 = vmatpush3.bf16.msra.mxu1 %v2601_v24 }
 0x363   : > { %2409 = vmatprep.subr.bf16.mxu1 %v2799_v0 }
 0x366   : > { %2410 = vmatpush3.bf16.msra.mxu1 %v2605_v27 }
 0x367   : > { %2415 = vmatprep.subr.bf16.mxu1 %v2799_v0 }
 0x41c   : > { %v1348_v30 = vpop.f32.mrb[8].mxu1 }
 0x41d   : > { %v1349_v31 = vadd.f32 %v2141_v29, %v1348_v30  ;;  %v2393_v32 = vpop.f32.mrb[9].mxu1 }
 0x41e   : > { %v1351_v33 = vpop.f32.mrb[10].mxu1 }
 0x41f   : > { %v1352_v34 = vadd.f32 %v2141_v29, %v1351_v33  ;;  %v2394_v35 = vpop.f32.mrb[11].mxu1  ;;  %v1355_v36 = vmax.f32 %v1349_v31, 0.0  ;;  %v2174_v29 = vld [vmem:[%s3226_s20] ss:$0 sm:$0xff] }
 0x421   : > { %v1356_v37 = vmax.f32 %v1352_v34, 0.0 }
 0x423   : > { %v1357_v40 = vpack.c.bf16 %v1356_v37, %v1355_v36 }
 0x425   : > { %1568 = vmatmul.mubr.bf16.vlgmr.msra.gmra.mrb[12].mxu0 %v1357_v40  ;;  %2412 = vmatmul.mubr.bf16.vlgmr.msra.gmra.mrb[12].mxu1 %v1357_v40 }
 0x426   : > { %2416 = vmatpush3.bf16.msra.mxu1 %v2606_v38  ;;  %2285 = vmatpush3.bf16.msra.mxu0 %v2608_v39 }
 0x427   : > { %2417 = vmatprep.subr.bf16.mxu1 %v2799_v0  ;;  %2286 = vmatprep.subr.bf16.mxu0 %v2610_v41 }
 0x428   : > { %2431 = vmatprep.mubr.msk.bf16.mxu1 %vm2801_vm0, %v2799_v0 }
 0x42a   : > { %2418 = vmatpush3.bf16.msra.mxu1 %v2609_v42  ;;  %2287 = vmatpush3.bf16.msra.mxu0 %v2611_v43 }
 0x42b   : > { %2419 = vmatprep.subr.bf16.mxu1 %v2799_v0  ;;  %2288 = vmatprep.subr.bf16.mxu0 %v2613_v44 }
 0x42e   : > { %2420 = vmatpush3.bf16.msra.mxu1 %v2612_v45  ;;  %2289 = vmatpush3.bf16.msra.mxu0 %v2614_v46 }
 0x42f   : > { %2421 = vmatprep.subr.bf16.mxu1 %v2799_v0  ;;  %2290 = vmatprep.subr.bf16.mxu0 %v2616_v47 }
 0x432   : > { %2422 = vmatpush3.bf16.msra.mxu1 %v2615_v48  ;;  %2291 = vmatpush3.bf16.msra.mxu0 %v2617_v49 }
 0x433   : > { %2423 = vmatprep.subr.bf16.mxu1 %v2799_v0  ;;  %2292 = vmatprep.subr.bf16.mxu0 %v2619_v50 }
 0x436   : > { %2424 = vmatpush3.bf16.msra.mxu1 %v2618_v51  ;;  %2293 = vmatpush3.bf16.msra.mxu0 %v2620_v54 }
 0x437   : > { %2425 = vmatprep.subr.bf16.mxu1 %v2799_v0  ;;  %2294 = vmatprep.subr.bf16.mxu0 %v2622_v57 }
 0x43a   : > { %2426 = vmatpush3.bf16.msra.mxu1 %v2621_v58  ;;  %2295 = vmatpush3.bf16.msra.mxu0 %v2623_v59 }
 0x43b   : > { %2427 = vmatprep.subr.bf16.mxu1 %v2799_v0  ;;  %2296 = vmatprep.subr.bf16.mxu0 %v2625_v61 }
 0x43e   : > { %2428 = vmatpush3.bf16.msra.mxu1 %v2624_v60  ;;  %2297 = vmatpush3.bf16.msra.mxu0 %v2626_v62 }
 0x43f   : > { %2429 = vmatprep.subr.bf16.mxu1 %v2799_v0  ;;  %2298 = vmatprep.subr.bf16.mxu0 %v2628_v2  ;;  %v1399_v0 = vrot.slane %v1390_v3, %v601_v55 }
 0x442   : > { %2430 = vmatpush3.bf16.msra.mxu1 %v2627_v63  ;;  %2299 = vmatpush3.bf16.msra.mxu0 %v2629_v1 }
 0x4f8   : > { %v1569_v6 = vpop.f32.mrb[12].mxu0  ;;  %v1612_v7 = vpop.f32.mrb[12].mxu1 }
 0x4f9   : > { %v1570_v8 = vadd.f32 %v1569_v6, %v1395_v4  ;;  %v1613_v9 = vadd.f32 %v1612_v7, %v1403_v5  ;;  %v1571_v10 = vpop.f32.mrb[13].mxu0  ;;  %v2413_v11 = vpop.f32.mrb[13].mxu1 }
 0x4fa   : > { %v1572_v12 = vadd.f32 %v1571_v10, %v1399_v0  ;;  %v1573_v13 = vpop.f32.mrb[14].mxu0  ;;  %v1615_v14 = vpop.f32.mrb[14].mxu1 }
 0x4fb   : > { %v1574_v15 = vadd.f32 %v1573_v13, %v1395_v4  ;;  %v1616_v16 = vadd.f32 %v1615_v14, %v1403_v5  ;;  %v1575_v17 = vpop.f32.mrb[15].mxu0  ;;  %v2414_v18 = vpop.f32.mrb[15].mxu1  ;;  %v1619_v19 = vmax.f32 %v1570_v8, 0.0  ;;  %v1621_v20 = vmax.f32 %v1613_v9, 0.0 }
 0x4fc   : > { %v1576_v53 = vadd.f32 %v1575_v17, %v1399_v0  ;;  %v1620_v52 = vmax.f32 %v1572_v12, 0.0 }
 0x4fd   : > { %v1622_v56 = vmax.f32 %v1574_v15, 0.0  ;;  %v1624_v21 = vmax.f32 %v1616_v16, 0.0 }
 0x4fe   : > { %v1623_v55 = vmax.f32 %v1576_v53, 0.0 }
 0x4ff   : > { %v1625_v22 = vpack.c.bf16 %v1622_v56, %v1619_v19  ;;  %v1627_v23 = vpack.c.bf16 %v1624_v21, %v1621_v20 }
 0x500   : > { %v1626_v24 = vpack.c.bf16 %v1623_v55, %v1620_v52 }
 0x501   : > { %2432 = vmatmul.mubr.bf16.vlgmr.msra.gmra.mrb[16].mxu1 %v1627_v23 }
 0x502   : > { %1859 = vmatprep.mubr.bf16.mxu0 %v1626_v24 }
 0x503   : > { %1860 = vmatmul.mubr.bf16.vlgmr.msra.gmra.mrb[16].mxu0 %v1625_v22 }
 0x5d4   : > { %v1902_v25 = vpop.f32.mrb[16].mxu1 }
 0x5d5   : > { %v2433_v26 = vpop.f32.mrb[17].mxu1 }
 0x5d6   : > { %v2300_v27 = vpop.f32.mrb[16].mxu0  ;;  %v1905_v28 = vpop.f32.mrb[18].mxu1 }
 0x5d7   : > { %v2301_v30 = vpop.f32.mrb[17].mxu0  ;;  %v2434_v31 = vpop.f32.mrb[19].mxu1 }
 0x5d8   : > { %v2302_v32 = vadd.f32 %v2301_v30, %v2300_v27  ;;  %v2303_v33 = vpop.f32.mrb[18].mxu0 }
 0x5d9   : > { %v2304_v34 = vpop.f32.mrb[19].mxu0 }
 0x5da   : > { %v1862_v35 = vadd.f32 %v2302_v32, %v2174_v29  ;;  %v2305_v36 = vadd.f32 %v2304_v34, %v2303_v33 }
 0x5dc   : > { %v1903_v37 = vadd.f32 %v1902_v25, %v1862_v35  ;;  %v1865_v38 = vadd.f32 %v2305_v36, %v2174_v29 }
 0x5de   : > { %v1906_v39 = vadd.f32 %v1905_v28, %v1865_v38 }
 0x5e0   : > { %v2215_v40 = vpack.c.bf16 %v1906_v39, %v1903_v37 }
 0x5e2   : > { %2216 = vst [vmem:[%s556_s28] sm:$0xff] %v2215_v40  }
 0x5e3 PF: > { %s28_s29 = sadd.s32 1, %s2788_s29  }
 0x5e4   : > { %p25_p2 = scmp.ge.s32.totalorder %s28_s29, 4  }
 0x5e6   :  { %27 = sbr.rel (!%p25_p2) target bundleno = 7 (0x7), region = 135 }
 0x5ed   :  { %1958 = vsyncpa [#allocation3], 1 }
 0x5ee   :  { %1960 = vsyncpa [#allocation3 + $0x1], 1 }
 0x5ef   :  { %1961 = vsyncpa [#allocation5], 1 }
 0x5f0   :  { %1962 = vsyncpa [#allocation8], 1 }

</bundles_post_ra>
